<compile_context>
chip_gen: v7x
topology: tpu7x:2x2x1
jax: 0.10.0
libtpu: 0.0.40
codegen_flags: <defaults>
</compile_context>

<pallas_src>
import functools

import jax
import jax.numpy as jnp
from jax import lax
from jax.experimental import pallas as pl
from jax.experimental.pallas import tpu as pltpu

_LANES = 128


def _round_up(x, m):
    return (x + m - 1) // m * m


def _tpu_generation():
    """Best-effort TPU generation detection (5, 6, 7) or 0 if unknown."""
    try:
        kind = jax.devices()[0].device_kind.lower()
    except Exception:
        return 0
    for g in (5, 6, 7):
        if "v%d" % g in kind:
            return g
    return 0


def _eca_kernel(w_ref, b_ref, x_ref, o_ref, acc_ref, *, C, HW, hw_tile, mask_tail):
    # w_ref: SMEM (3,) conv weights; b_ref: SMEM (1,) conv bias.
    # x_ref block: (b_blk, C, hw_tile); o_ref block: (b_blk, C, 1);
    # acc_ref scratch: (b_blk, C, 1) f32 partial per-channel sums.
    k = pl.program_id(1)
    num_k = pl.num_programs(1)

    @pl.when(k == 0)
    def _():
        acc_ref[...] = jnp.zeros_like(acc_ref)

    def _accumulate(xb):
        # Lane-axis VPU sum; exact f32 accumulation, hidden under the DMA.
        acc_ref[...] += jnp.sum(xb.astype(jnp.float32), axis=-1, keepdims=True)

    if mask_tail:
        # Only the last HW tile is partial — mask only there.
        @pl.when(k < num_k - 1)
        def _():
            _accumulate(x_ref[...])

        @pl.when(k == num_k - 1)
        def _():
            xb = x_ref[...]
            col = lax.broadcasted_iota(jnp.int32, xb.shape, 2)
            _accumulate(jnp.where(k * hw_tile + col < HW, xb, jnp.zeros_like(xb)))
    else:
        _accumulate(x_ref[...])

    @pl.when(k == num_k - 1)
    def _():
        pooled = acc_ref[...] * (1.0 / HW)                    # (b_blk, C, 1) f32
        w0 = w_ref[0]
        w1 = w_ref[1]
        w2 = w_ref[2]
        bias = b_ref[0]
        if C > 1:
            # 3-tap conv across channels (zero padding), via sublane shifts.
            zero = jnp.zeros((pooled.shape[0], 1, 1), jnp.float32)
            p_m1 = jnp.concatenate([zero, pooled[:, : C - 1, :]], axis=1)
            p_p1 = jnp.concatenate([pooled[:, 1:, :], zero], axis=1)
            conv = w0 * p_m1 + w1 * pooled + w2 * p_p1 + bias
        else:
            conv = w1 * pooled + bias
        o_ref[...] = jax.nn.sigmoid(conv)


def eca_weight(x, conv_w, conv_b):
    """x: [B, C, H, W] float. conv_w: [3] f32, conv_b: [1] f32 -> [B, C, 1, 1] f32."""
    B, C, H, W = x.shape
    HW = H * W
    x_flat = x.reshape(B, C, HW)
    itemsize = x_flat.dtype.itemsize

    gen = _tpu_generation()
    # Per-generation block-byte target (kernel is purely HBM-read bound).
    target = {5: 4 << 20, 6: 6 << 20, 7: 8 << 20}.get(gen, 6 << 20)
    # VMEM request ceiling: keep headroom on 64-MiB/TC parts (v7x / unknown).
    vmem_cap = {5: 96 << 20, 6: 96 << 20, 7: 40 << 20}.get(gen, 40 << 20)
    multi_core = gen in (7, 0)

    # ---- spatial (lane) tile: multiple of 128 lanes, or full HW ----
    if C * HW * itemsize <= target:
        hw_tile = HW
    else:
        hw_tile = (target // (C * itemsize)) // _LANES * _LANES
        hw_tile = max(hw_tile, 512)      # keep each strided DMA row >= 2 KiB (f32)
        if hw_tile >= HW:
            hw_tile = HW

    # ---- batch packing (amortize the ~0.35us/step overhead on small maps) ----
    per_batch = C * hw_tile * itemsize
    b_blk = int(max(1, min(B, target // max(per_batch, 1))))
    if multi_core and B >= 2:
        b_blk = min(b_blk, -(-B // 2))   # ceil(B/2): keep >= 2 "parallel" blocks

    # ---- make the double-buffered working set fit the VMEM budget ----
    def _vmem_needed(bb, hwt):
        xb = bb * _round_up(C, 8) * _round_up(hwt, _LANES) * itemsize
        pb = bb * _round_up(C, 8) * _LANES * 4   # (bb, C, 1) f32, lane/sublane padded
        return 2 * xb + 2 * pb + pb + (4 << 20)  # 2x x, 2x out, 1x acc, headroom

    while _vmem_needed(b_blk, hw_tile) > vmem_cap:
        if b_blk > 1:
            b_blk = (b_blk + 1) // 2
        elif hw_tile > _LANES:
            hw_tile = max(_LANES, (hw_tile // 2) // _LANES * _LANES)
        else:
            break

    mask_tail = (HW % hw_tile) != 0
    grid = (pl.cdiv(B, b_blk), pl.cdiv(HW, hw_tile))
    vmem_limit = int(min(max(_vmem_needed(b_blk, hw_tile), 16 << 20), vmem_cap))

    kernel = functools.partial(_eca_kernel, C=C, HW=HW, hw_tile=hw_tile,
                               mask_tail=mask_tail)

    # NOTE: pipeline_mode=pl.Buffered(3) on the x spec is a cheap follow-up if
    # profiles show exposed DMA at very large C (many short strided rows).
    pooled_w = pl.pallas_call(
        kernel,
        out_shape=jax.ShapeDtypeStruct((B, C, 1), jnp.float32),
        grid=grid,
        in_specs=[
            pl.BlockSpec(memory_space=pltpu.MemorySpace.SMEM),   # conv weights (3,)
            pl.BlockSpec(memory_space=pltpu.MemorySpace.SMEM),   # conv bias (1,)
            pl.BlockSpec((b_blk, C, hw_tile), lambda b, k: (b, 0, k)),
        ],
        out_specs=pl.BlockSpec((b_blk, C, 1), lambda b, k: (b, 0, 0)),
        scratch_shapes=[pltpu.VMEM((b_blk, C, 1), jnp.float32)],
        compiler_params=pltpu.CompilerParams(
            dimension_semantics=("parallel", "arbitrary"),
            vmem_limit_bytes=vmem_limit,
        ),
        cost_estimate=pl.CostEstimate(
            flops=B * C * HW + 10 * B * C,
            transcendentals=B * C,
            bytes_accessed=B * C * HW * itemsize + B * C * 4 + 16,
        ),
    )(conv_w, conv_b, x_flat)

    # (B, C, 1) -> (B, C, 1, 1): pure metadata reshape.
    return pooled_w.reshape(B, C, 1, 1)


def _reference(x, conv_w, conv_b):
    # Pure-JAX reference of the PyTorch forward for validation.
    pooled = x.astype(jnp.float32).mean(axis=(2, 3))           # (B, C)
    padded = jnp.pad(pooled, ((0, 0), (1, 1)))
    conv = (conv_w[0] * padded[:, :-2]
            + conv_w[1] * padded[:, 1:-1]
            + conv_w[2] * padded[:, 2:]
            + conv_b[0])
    return jax.nn.sigmoid(conv)[:, :, None, None]              # (B, C, 1, 1)


if __name__ == "__main__":
    key = jax.random.PRNGKey(0)
    k_x, k_w, k_b = jax.random.split(key, 3)

    B, C, H, W = 2, 4, 16, 16
    x = jax.random.normal(k_x, (B, C, H, W), dtype=jnp.float32)

    # Deterministic Conv1d(1, 1, kernel_size=3) parameters
    # (PyTorch default init is U(-1/sqrt(fan_in), 1/sqrt(fan_in)), fan_in=3).
    bound = 1.0 / jnp.sqrt(3.0)
    conv_w = jax.random.uniform(k_w, (3,), minval=-bound, maxval=bound,
                                dtype=jnp.float32)
    conv_b = jax.random.uniform(k_b, (1,), minval=-bound, maxval=bound,
                                dtype=jnp.float32)

    out = eca_weight(x, conv_w, conv_b)
    out = jax.block_until_ready(out)

    ref = _reference(x, conv_w, conv_b)
    assert out.shape == (B, C, 1, 1), out.shape
    assert jnp.allclose(out, ref, atol=1e-5, rtol=1e-5), "mismatch vs reference"

    print("KERNEL_OK")
</pallas_src>

<mosaic_0001>
module attributes {stable_mosaic.version = 11 : i64} {
  func.func @_eca_kernel(%arg0: i32, %arg1: i32, %arg2: memref<3xf32, #tpu.memory_space<smem>>, %arg3: memref<1xf32, #tpu.memory_space<smem>>, %arg4: memref<1x4x256xf32, #tpu.memory_space<vmem>>, %arg5: memref<1x4x1xf32, #tpu.memory_space<vmem>>, %arg6: memref<1x4x1xf32, #tpu.memory_space<vmem>>) attributes {dimension_semantics = [#tpu.dimension_semantics<parallel>, #tpu.dimension_semantics<arbitrary>], iteration_bounds = array<i64: 2, 1>, scalar_prefetch = 0 : i64, scratch_operands = 1 : i64, tpu.core_type = #tpu.core_type<tc>, window_params = [{transform_indices = @transform_0, window_bounds = array<i64: 3>}, {transform_indices = @transform_1, window_bounds = array<i64: 1>}, {transform_indices = @transform_2, window_bounds = array<i64: 1, 4, 256>}, {transform_indices = @transform_3, window_bounds = array<i64: 1, 4, 1>}]} {
    %c0_i32 = arith.constant 0 : i32
    %0 = arith.cmpi eq, %arg1, %c0_i32 : i32
    %1 = arith.extui %0 : i1 to i32
    %c0_i32_0 = arith.constant 0 : i32
    %2 = arith.cmpi ne, %1, %c0_i32_0 : i32
    scf.if %2 {
      %cst_11 = arith.constant 0.000000e+00 : f32
      %12 = vector.broadcast %cst_11 : f32 to vector<1x4x1xf32>
      %c0_12 = arith.constant 0 : index
      %c0_13 = arith.constant 0 : index
      %c0_14 = arith.constant 0 : index
      %13 = vector.load %arg6[%c0_12, %c0_13, %c0_14] : memref<1x4x1xf32, #tpu.memory_space<vmem>>, vector<1x4x1xf32>
      tpu.vector_store %arg6[%c0_12, %c0_13, %c0_14], %12 {strides = array<i32>} : memref<1x4x1xf32, #tpu.memory_space<vmem>>, vector<1x4x1xf32>,
    } else {
    }
    %c0 = arith.constant 0 : index
    %c0_1 = arith.constant 0 : index
    %c0_2 = arith.constant 0 : index
    %3 = vector.load %arg4[%c0, %c0_1, %c0_2] : memref<1x4x256xf32, #tpu.memory_space<vmem>>, vector<1x4x256xf32>
    %c0_3 = arith.constant 0 : index
    %c0_4 = arith.constant 0 : index
    %c0_5 = arith.constant 0 : index
    %4 = vector.load %arg6[%c0_3, %c0_4, %c0_5] : memref<1x4x1xf32, #tpu.memory_space<vmem>>, vector<1x4x1xf32>
    %cst = arith.constant dense<0.000000e+00> : vector<1x4xf32>
    %5 = vector.multi_reduction <add>, %3, %cst [2] : vector<1x4x256xf32> to vector<1x4xf32>
    %6 = vector.shape_cast %5 : vector<1x4xf32> to vector<1x4x1xf32>
    %7 = arith.addf %4, %6 : vector<1x4x1xf32>
    %c0_6 = arith.constant 0 : index
    %c0_7 = arith.constant 0 : index
    %c0_8 = arith.constant 0 : index
    %8 = vector.load %arg6[%c0_6, %c0_7, %c0_8] : memref<1x4x1xf32, #tpu.memory_space<vmem>>, vector<1x4x1xf32>
    tpu.vector_store %arg6[%c0_6, %c0_7, %c0_8], %7 {strides = array<i32>} : memref<1x4x1xf32, #tpu.memory_space<vmem>>, vector<1x4x1xf32>,
    %c0_i32_9 = arith.constant 0 : i32
    %9 = arith.cmpi eq, %arg1, %c0_i32_9 : i32
    %10 = arith.extui %9 : i1 to i32
    %c0_i32_10 = arith.constant 0 : i32
    %11 = arith.cmpi ne, %10, %c0_i32_10 : i32
    scf.if %11 {
      %c0_11 = arith.constant 0 : index
      %c0_12 = arith.constant 0 : index
      %c0_13 = arith.constant 0 : index
      %12 = vector.load %arg6[%c0_11, %c0_12, %c0_13] : memref<1x4x1xf32, #tpu.memory_space<vmem>>, vector<1x4x1xf32>
      %cst_14 = arith.constant 3.906250e-03 : f32
      %13 = vector.broadcast %cst_14 : f32 to vector<1x4x1xf32>
      %14 = arith.mulf %12, %13 : vector<1x4x1xf32>
      %c0_15 = arith.constant 0 : index
      %15 = memref.load %arg2[%c0_15] : memref<3xf32, #tpu.memory_space<smem>>
      %c1 = arith.constant 1 : index
      %16 = memref.load %arg2[%c1] : memref<3xf32, #tpu.memory_space<smem>>
      %c2 = arith.constant 2 : index
      %17 = memref.load %arg2[%c2] : memref<3xf32, #tpu.memory_space<smem>>
      %c0_16 = arith.constant 0 : index
      %18 = memref.load %arg3[%c0_16] : memref<1xf32, #tpu.memory_space<smem>>
      %cst_17 = arith.constant 0.000000e+00 : f32
      %19 = vector.broadcast %cst_17 : f32 to vector<1x1x1xf32>
      %20 = vector.extract_strided_slice %14 {offsets = [0, 0, 0], sizes = [1, 3, 1], strides = [1, 1, 1]} : vector<1x4x1xf32> to vector<1x3x1xf32>
      %21 = tpu.concatenate %19, %20 in 1 : vector<1x1x1xf32>, vector<1x3x1xf32> -> vector<1x4x1xf32>
      %22 = vector.extract_strided_slice %14 {offsets = [0, 1, 0], sizes = [1, 3, 1], strides = [1, 1, 1]} : vector<1x4x1xf32> to vector<1x3x1xf32>
      %23 = tpu.concatenate %22, %19 in 1 : vector<1x3x1xf32>, vector<1x1x1xf32> -> vector<1x4x1xf32>
      %24 = vector.broadcast %15 : f32 to vector<1x4x1xf32>
      %25 = arith.mulf %24, %21 : vector<1x4x1xf32>
      %26 = vector.broadcast %16 : f32 to vector<1x4x1xf32>
      %27 = arith.mulf %26, %14 : vector<1x4x1xf32>
      %28 = arith.addf %25, %27 : vector<1x4x1xf32>
      %29 = vector.broadcast %17 : f32 to vector<1x4x1xf32>
      %30 = arith.mulf %29, %23 : vector<1x4x1xf32>
      %31 = arith.addf %28, %30 : vector<1x4x1xf32>
      %32 = vector.broadcast %18 : f32 to vector<1x4x1xf32>
      %33 = arith.addf %31, %32 : vector<1x4x1xf32>
      %34 = arith.negf %33 : vector<1x4x1xf32>
      %35 = math.exp %34 : vector<1x4x1xf32>
      %cst_18 = arith.constant 1.000000e+00 : f32
      %36 = vector.broadcast %cst_18 : f32 to vector<1x4x1xf32>
      %37 = arith.addf %36, %35 : vector<1x4x1xf32>
      %38 = arith.divf %36, %37 : vector<1x4x1xf32>
      %c0_19 = arith.constant 0 : index
      %c0_20 = arith.constant 0 : index
      %c0_21 = arith.constant 0 : index
      %39 = vector.load %arg5[%c0_19, %c0_20, %c0_21] : memref<1x4x1xf32, #tpu.memory_space<vmem>>, vector<1x4x1xf32>
      tpu.vector_store %arg5[%c0_19, %c0_20, %c0_21], %38 {strides = array<i32>} : memref<1x4x1xf32, #tpu.memory_space<vmem>>, vector<1x4x1xf32>,
    } else {
    }
    return
  }
  func.func @transform_0(%arg0: i32, %arg1: i32) -> i32 {
    %c0_i32 = arith.constant 0 : i32
    %c0_i32_0 = arith.constant 0 : i32
    return %c0_i32 : i32
  }
  func.func @transform_1(%arg0: i32, %arg1: i32) -> i32 {
    %c0_i32 = arith.constant 0 : i32
    %c0_i32_0 = arith.constant 0 : i32
    return %c0_i32 : i32
  }
  func.func @transform_2(%arg0: i32, %arg1: i32) -> (i32, i32, i32) {
    %c0_i32 = arith.constant 0 : i32
    %c0_i32_0 = arith.constant 0 : i32
    return %arg0, %c0_i32, %arg1 : i32, i32, i32
  }
  func.func @transform_3(%arg0: i32, %arg1: i32) -> (i32, i32, i32) {
    %c0_i32 = arith.constant 0 : i32
    %c0_i32_0 = arith.constant 0 : i32
    %c0_i32_1 = arith.constant 0 : i32
    return %arg0, %c0_i32, %c0_i32_0 : i32, i32, i32
  }
}

</mosaic_0001>

<bundles_post_ra>
// kernel: tpu_custom_call.1
= control target key start
LH: loop header
LB: loop body
LE: loop exit
PB: predicated region body
PF: predicated region fallthrough
CT: control target
= control target key end

     0   :  { %s728_s0 = inlined_call_operand.vmem [shape: f32[3], index: 0, kind: input, shape index: {}]   ;;  %s729_s1 = inlined_call_operand.<no memory space> [shape: f32[1], index: 1, kind: input, shape index: {}]   ;;  %s730_s2 = inlined_call_operand.hbm [shape: f32[2,4,256], index: 2, kind: input, shape index: {}]   ;;  %s731_s3 = inlined_call_operand.vmem [shape: f32[2,4,1], index: 3, kind: output, shape index: {}]  }
   0x1   :  { %8 = sst [smem:[#allocation3]] %s729_s1 }
   0x2   :  { %9 = vsyncpa [#allocation6], 0 }
   0x3   :  { %10 = vsyncpa [#allocation5], 0 }
   0x4   :  { %12 = vsyncpa [#allocation5 + $0x1], 0  ;;  %s579_s14 = smov 0   ;;  %s581_s15 = smov 0  }
   0x5   :  { %s583_s16 = smov 0   ;;  %s585_s17 = smov 0  }
   0x6   :  { %s587_s18 = smov 0   ;;  %s589_s19 = smov 0  }
   0x7 LB: > { %s362_s1 = sadd.s32 4294967295, %s551_s19   ;;  %p94_p0 = scmp.ne.s32.totalorder %s535_s15, %s531_s14  ;;  %s551_s19 = sphi %s589_s19, %s18_s19   ;;  %s547_s18 = sphi %s587_s18, %s746_s18   ;;  %s543_s17 = sphi %s585_s17, %s745_s17   ;;  %s539_s16 = sphi %s583_s16, %s744_s16   ;;  %s535_s15 = sphi %s581_s15, %s743_s15   ;;  %s531_s14 = sphi %s579_s14, %s742_s14  }
   0x8   : > { %p609_p1 = scmp.eq.s32.totalorder %s362_s1, 0  ;;  %p364_p2 = scmp.ge.s32.totalorder %s551_s19, 1 }
   0x9   : > { %p131_p3 = scmp.lt.s32.totalorder %s551_s19, 3  ;;  %s144_s24 = sshll.u32 %s728_s0, 4  ;;  %s145_s24 = int_to_ptr.vmem [resolvable:$true] %s144_s24 }
   0xa   : > { %s735_s20 = scalar_select %p609_p1, 1, 0 }
   0xb   : > { %p617_p4 = por %p609_p1, %p94_p0  ;;  %p624_p5 = pnand %p364_p2, %p131_p3 }
   0xc   : > { %s30_s27 = sadd.s32 1, %s547_s18  ;;  %s81_s28 = sadd.s32 1, %s539_s16 }
   0xd   : > { %s736_s21 = scalar_select %p617_p4, 1, 0 }
   0xe   : > { %p386_p6 = pneg %p624_p5  ;;  %p32_p8 = scmp.ge.s32.totalorder %s30_s27, 2 }
   0xf   : > { %s452_s29 = scalar_lea.vmem %s145_s24, 16  ;;  %p460_p13 = scmp.lt.s32.totalorder %s145_s24, %s145_s24 }
  0x10   : > { %p632_p7 = pnand %p386_p6, %p609_p1  ;;  %p453_p9 = scmp.ne.s32.totalorder %s145_s24, %s452_s29 }
  0x11   : > { %p461_p0 = scmp.lt.s32.totalorder %s452_s29, %s452_s29 }
  0x12   : > { %p454_p10 = pneg %p632_p7 }
  0x13   : > { %p462_p2 = por %p461_p0, %p460_p13 }
  0x14   : > { %p455_p11 = pnand %p454_p10, %p453_p9 }
  0x16   : > { %p456_p12 = pneg %p455_p11 }
  0x18   : > { %p463_p3 = pnand %p462_p2, %p456_p12 }
  0x1a   : > { %466 = shalt.err (!%p463_p3)
}
  0x1b   : > { %s553_s30 = smov [#allocation4]   ;;  %s748_s27 = smov (%p32_p8, %s30_s27), 0 }
  0x1c   : > { %389 = dma.vmem_to_smem (!%p632_p7), %s145_s24, 16, %s553_s30, [#allocation6]  }
  0x1d   : > { %p88_p6 = scmp.ne.s32.totalorder %s539_s16, %s535_s15  ;;  %p89_p9 = scmp.eq.s32.totalorder %s551_s19, 0 }
  0x1e   : > { %s76_s4 = ssub.s32 %s547_s18, %s748_s27  ;;  %p395_p10 = scmp.lt.s32.totalorder %s551_s19, 2 }
  0x1f   : > { %p79_p11 = scmp.eq.s32.totalorder %s76_s4, 0  ;;  %p90_p12 = por %p89_p9, %p88_p6 }
  0x20   : > { %s158_s5 = sand.u32 1, %s539_s16   ;;  %s379_s6 = sshll.u32 %s547_s18, 7 }
  0x21   : > { %s653_s7 = scalar_select %p79_p11, %s539_s16, %s81_s28  }
  0x22   : > { %s367_s8 = sshll.u32 %s158_s5, 3  ;;  %s658_s11 = scalar_lea.hbm %s730_s2, %s379_s6 }
  0x23   : > { %s162_s12 = scalar_lea.vmem [#allocation7], %s367_s8  ;;  %p660_p7 = pnand %p395_p10, %p90_p12 }
  0x24   : > { %s172_s13 = sshll.u32 %s162_s12, 4  ;;  %s159_s1 = scalar_lea.sflag [#allocation5], %s158_s5  ;;  %s664_s13 = int_to_ptr.vmem [resolvable:$true] %s172_s13 }
  0x25   : > { %s467_s22 = scalar_lea.hbm %s658_s11, 128  ;;  %p469_p13 = pneg %p660_p7 }
  0x26   : > { %p468_p8 = scmp.ne.s32.totalorder %s658_s11, %s467_s22  ;;  %s472_s26 = scalar_lea.hbm %s730_s2, 256 }
  0x27   : > { %p473_p3 = scmp.lt.u32.totalorder %s658_s11, %s730_s2  ;;  %p474_p6 = scmp.lt.u32.totalorder %s472_s26, %s467_s22 }
  0x28   : > { %p470_p0 = pnand %p469_p13, %p468_p8  ;;  %p476_p10 = scmp.lt.u32.totalorder %s467_s22, %s658_s11 }
  0x29   : > { %p475_p9 = por %p474_p6, %p473_p3 }
  0x2a   : > { %p471_p2 = pneg %p470_p0 }
  0x2b   : > { %p477_p11 = por %p476_p10, %p475_p9 }
  0x2d   : > { %p478_p12 = pnand %p477_p11, %p471_p2 }
  0x2f   : > { %481 = shalt.err (!%p478_p12)
}
  0x30   : > { %s482_s30 = scalar_lea.vmem %s664_s13, 128  ;;  %s554_s4 = smov [#allocation7]  }
  0x31   : > { %p483_p8 = scmp.ne.s32.totalorder %s664_s13, %s482_s30  ;;  %s487_s5 = sshll.u32 %s554_s4, 4  ;;  %s488_s5 = int_to_ptr.vmem [resolvable:$false] %s487_s5 }
  0x32   : > { %s489_s6 = scalar_lea.vmem %s488_s5, 256  ;;  %p490_p1 = scmp.lt.s32.totalorder %s664_s13, %s488_s5 }
  0x33   : > { %p485_p0 = pnand %p483_p8, %p469_p13  ;;  %p491_p3 = scmp.lt.s32.totalorder %s489_s6, %s482_s30 }
  0x35   : > { %p486_p4 = pneg %p485_p0  ;;  %p492_p6 = por %p491_p3, %p490_p1 }
  0x37   : > { %p493_p9 = pnand %p492_p6, %p486_p4 }
  0x39   : > { %496 = shalt.err (!%p493_p9)
}
  0x3a   : > { %393 = dma.hbm_to_vmem [thread:$0]  (!%p660_p7), %s658_s11, 128, %s664_s13, %s159_s1  }
  0x3b   : > { %181 = sbr.rel (%p624_p5) target bundleno = 271 (0x10f), region = 32  ;;  %p740_p13 = scmp.ne.s32.totalorder (!%p624_p5), %s735_s20, 0 }
  0x42   : > { %522 = dma.done.wait (%p740_p13), [#allocation6], 16  }
  0x43   : > { %524 = vsyncadd (%p740_p13), [#allocation6], 4294967280  ;;  %s187_s8 = sand.u32 1, %s535_s15   ;;  %p741_p1 = scmp.ne.s32.totalorder %s736_s21, 0 }
  0x44   : > { %s372_s9 = sshll.u32 %s187_s8, 3  ;;  %s188_s10 = scalar_lea.sflag [#allocation5], %s187_s8 }
  0x45   : > { %s191_s12 = scalar_lea.vmem [#allocation7], %s372_s9 }
  0x46   : > { %526 = dma.done.wait (%p741_p1), %s188_s10, 128  }
  0x47   : > { %528 = vsyncadd (%p741_p1), %s188_s10, 4294967168 }
  0x48   : > { %196 = sfence }
  0x49   : > { %v225_v0 = vld [vmem:[%s191_s12] sm:$0xff]  ;;  %vm230_vm0 = vcmask 1043456   ;;  %vm223_vm1 = vcmask 3072   ;;  %v555_v3 = vmov 0.0   ;;  %s244_s20 = sld [smem:[#allocation4]]  ;;  %s374_s21 = sld [smem:[#allocation4 + $0x1]] }
  0x4a   : > { %v228_v1 = vcombine.high %v225_v0, %v225_v0  ;;  %v231_v2 = vsel %vm230_vm0, %v225_v0, 0.0  ;;  %224 = vst.msk [vmem:[#allocation2] sm:$0xf] %vm223_vm1, %v555_v3  ;;  %s375_s25 = sld [smem:[#allocation4 + $0x2]]  ;;  %s247_s11 = sld [smem:[#allocation3]]  ;;  %vm251_vm2 = vcmask 1040384  }
  0x4b   : > { %vm255_vm3 = vcmask 1042432   ;;  %p215_p4 = scmp.lt.s32.totalorder %s543_s17, 1 }
  0x4c   : > { %v232_v4 = vsel %vm230_vm0, %v228_v1, 0.0 }
  0x4d   : > { %v233_v5 = vadd.f32 %v232_v4, %v231_v2  ;;  %s750_s17 = smov (!%p215_p4, %s543_s17), 1 }
  0x4e   : > { %s373_s13 = sshll.u32 %s750_s17, 2 }
  0x4f   : > { %234 = vadd.xlane.f32.xlu0 %v233_v5  ;;  %v257_v13 = vstv %s244_s20  ;;  %v259_v14 = vstv %s374_s21  ;;  %s218_s22 = scalar_lea.vmem %s731_s3, %s373_s13 }
  0x50   : > { %v262_v17 = vstv %s375_s25  ;;  %v265_v22 = vstv %s247_s11 }
  0x51   : > { %v226_v6 = vld [vmem:[#allocation2] sm:$0xf] }
  0xdc   : > { %v235_v7 = vpop.xlane.xlu0 %234 }
  0xdd   : > { %v236_v8 = vadd.f32 %v235_v7, %v226_v6 }
  0xdf   : > { %238 = vst.msk [vmem:[#allocation2] sm:$0xf] %vm223_vm1, %v236_v8 }
  0xe6   : > { %v242_v9 = vld [vmem:[#allocation2] sm:$0xf] }
  0xe7   : > { %v243_v10 = vmul.f32 0.00390625, %v242_v9 }
  0xe9   : > { %v249_v11 = vrot.slane %v243_v10, 7  ;;  %v253_v12 = vrot.slane %v243_v10, 1  ;;  %v260_v19 = vmul.f32 %v259_v14, %v243_v10 }
  0xeb   : > { %v252_v15 = vsel %vm251_vm2, 0.0, %v249_v11  ;;  %v256_v16 = vsel %vm255_vm3, %v253_v12, 0.0 }
  0xec   : > { %v258_v18 = vmul.f32 %v257_v13, %v252_v15  ;;  %v263_v21 = vmul.f32 %v262_v17, %v256_v16 }
  0xee   : > { %v261_v20 = vadd.f32 %v260_v19, %v258_v18 }
  0xf0   : > { %v264_v23 = vadd.f32 %v263_v21, %v261_v20 }
  0xf2   : > { %v266_v24 = vadd.f32 %v265_v22, %v264_v23 }
  0xf4   : > { %v376_v25 = vmul.f32 -1.442695, %v266_v24 }
  0xf6   : > { %448 = vpow2.f32 %v376_v25 }
 0x100   : > { %v449_v26 = vpop.eup %448 }
 0x101   : > { %v270_v27 = vadd.f32 1.0, %v449_v26 }
 0x103   : > { %450 = vrcp.f32 %v270_v27 }
 0x10d   : > { %v451_v28 = vpop.eup %450 }
 0x10e   : > { %273 = vst.msk [vmem:[%s218_s22] sm:$0xf] %vm223_vm1, %v451_v28 }
 0x10f PF: > { %s18_s19 = sadd.s32 1, %s551_s19   ;;  %s742_s14 = smov %s535_s15 }
 0x110   : > { %p15_p5 = scmp.ge.s32.totalorder %s18_s19, 4   ;;  %s743_s15 = smov %s539_s16 }
 0x111   : > { %s744_s16 = smov %s653_s7  ;;  %s745_s17 = smov %s547_s18 }
 0x112   : > { %s746_s18 = smov %s748_s27  ;;  %17 = sbr.rel (!%p15_p5) target bundleno = 7 (0x7), region = 85 }
 0x119   :  { %293 = vsyncpa [#allocation5], 1 }
 0x11a   :  { %295 = vsyncpa [#allocation5 + $0x1], 1 }
 0x11b   :  { %296 = vsyncpa [#allocation6], 1 }
 0x11c   :  { %298 = vsyncpa [#allocation6 + $0x1], 1 }

</bundles_post_ra>
